<compile_context>
chip_gen: v5e
topology: v5e:2x2
jax: 0.10.0
libtpu: 0.0.40
codegen_flags: <defaults>
</compile_context>

<pallas_src>
import functools

import jax
import jax.numpy as jnp
from jax.experimental import pallas as pl
from jax.experimental.pallas import tpu as pltpu


# ----------------------------------------------------------------------------
# Kernels: one MXU matmul per grid step (+ optional bias add).
# The f32 -> bf16 cast of the activation tile happens HERE (VPU, free under
# DMA slack), not in the wrapper, so the state tensor is read from HBM once.
# ----------------------------------------------------------------------------
def _matmul_kernel(x_ref, w_ref, o_ref, *, compute_dtype):
    x = x_ref[...].astype(compute_dtype)
    acc = jnp.dot(x, w_ref[...], preferred_element_type=jnp.float32)
    o_ref[...] = acc.astype(o_ref.dtype)


def _matmul_bias_kernel(x_ref, w_ref, b_ref, o_ref, *, compute_dtype):
    x = x_ref[...].astype(compute_dtype)
    acc = jnp.dot(x, w_ref[...], preferred_element_type=jnp.float32)
    acc = acc + b_ref[...]          # (1, fold*control_dim) broadcasts over rows
    o_ref[...] = acc.astype(o_ref.dtype)


# ----------------------------------------------------------------------------
# Wrapper
# ----------------------------------------------------------------------------
def compose_control_matrix(layers):
    """K = W0 @ W1 @ ... @ W_{d-1}, composed once, in full f32 precision."""
    K = layers[0]
    for w in layers[1:]:
        K = jnp.dot(K, w, precision=jax.lax.Precision.HIGHEST)
    return K


def _round_up(x, m):
    return -(-x // m) * m


def linear_nn_state_controller(state, layers, bias=None, *,
                               compute_dtype=jnp.bfloat16,
                               block_rows=16384,
                               min_pallas_rows=4096,
                               target_lanes=256,
                               vmem_budget_bytes=12 * 1024 * 1024):
    """Pallas forward for LinearNNStateController.

    state : [batch, state_dim] f32
    layers: list of weight matrices [in_dim, out_dim] f32
    bias  : optional [1, control_dim] f32
    """
    K = compose_control_matrix(layers)
    batch, state_dim = state.shape
    control_dim = K.shape[1]
    out_dtype = state.dtype
    use_bias = bias is not None

    # --- tiny-batch fallback: launch/DMA overhead dwarfs the math ------------
    if batch < min_pallas_rows:
        out = jnp.dot(state, K)
        if use_bias:
            out = out + bias
        return out.astype(out_dtype)

    # --- lane-dense output fold ----------------------------------------------
    # Pack `fold` state rows per stored row so the output's last dim is 256
    # lanes (or 128 if 256 doesn't divide): unmasked stores, dense write-back,
    # full-width MXU N on v6e/v7x.
    fold = 1
    for lanes in (target_lanes, 128):
        if lanes % control_dim == 0:
            fold = lanes // control_dim
            break
    # TODO(synk): when control_dim divides neither 128 nor 256 (fold == 1) the
    # output stores are lane-masked; a perf (not correctness) cliff.

    # Pad only to a multiple of fold (<= fold-1 rows); skipped in the common
    # case where batch already divides.
    padded = _round_up(batch, fold)
    if padded != batch:
        state = jnp.pad(state, ((0, padded - batch), (0, 0)))
    F = padded // fold                      # folded rows
    fold_in = fold * state_dim
    fold_out = fold * control_dim

    # f32 state goes straight in (contiguous reshape = layout no-op).
    x = state.reshape(F, fold_in)
    # Block-diagonal kron(I_fold, K): tiny, VMEM-resident across the grid.
    w = jnp.kron(jnp.eye(fold, dtype=K.dtype), K) if fold > 1 else K
    w = w.astype(compute_dtype)

    # --- tile sizing (folded rows) --------------------------------------------
    q = 16                                  # sublane quantum (covers f32/bf16)
    desired = max(q, (block_rows // fold) // q * q)
    # VMEM cap: 2x double-buffered (f32 in-tile + f32 out-tile) + resident W,
    # kept under ~12 MiB so the 16 MiB v5e scoped default needs no override.
    row_bytes = fold_in * 4 + fold_out * 4
    w_bytes = fold_in * fold_out * jnp.dtype(compute_dtype).itemsize
    cap_vmem = max(q, (vmem_budget_bytes - w_bytes) // (2 * row_bytes) // q * q)
    # Keep n_tiles >= 2 so the "parallel" axis can shard across v7x's 2 TCs.
    cap_split = _round_up(pl.cdiv(F, 2), q)
    tile_f = max(q, min(desired, cap_vmem, cap_split))
    n_tiles = pl.cdiv(F, tile_f)            # ragged last block handled by Pallas

    kernel = functools.partial(
        _matmul_bias_kernel if use_bias else _matmul_kernel,
        compute_dtype=compute_dtype)

    inputs = [x, w]
    in_specs = [
        pl.BlockSpec((tile_f, fold_in), lambda i: (i, 0)),
        pl.BlockSpec((fold_in, fold_out), lambda i: (0, 0)),
    ]
    if use_bias:
        b = (jnp.tile(bias, (1, fold)) if fold > 1 else bias).astype(jnp.float32)
        inputs.append(b)
        in_specs.append(pl.BlockSpec((1, fold_out), lambda i: (0, 0)))

    out_folded = pl.pallas_call(
        kernel,
        grid=(n_tiles,),
        in_specs=in_specs,
        out_specs=pl.BlockSpec((tile_f, fold_out), lambda i: (i, 0)),
        out_shape=jax.ShapeDtypeStruct((F, fold_out), jnp.float32),
        compiler_params=pltpu.CompilerParams(
            dimension_semantics=("parallel",)),
    )(*inputs)

    out = out_folded.reshape(padded, control_dim)
    if padded != batch:
        out = out[:batch]
    return out.astype(out_dtype)


# ----------------------------------------------------------------------------
# Deterministic parameter construction mirroring the PyTorch __init__.
# ----------------------------------------------------------------------------
def make_params(key, state_dim, control_dim, depth, hidden_dim,
                init_std=0.01, zero_init=False, identity_init=False,
                use_bias=False):
    in_dims = [state_dim] + [hidden_dim] * (depth - 1)
    out_dims = [hidden_dim] * (depth - 1) + [control_dim]
    layers = []
    for i in range(depth):
        key, sub = jax.random.split(key)
        if zero_init:
            w = jnp.zeros((in_dims[i], out_dims[i]), jnp.float32)
        elif identity_init:
            w = jnp.eye(in_dims[i], out_dims[i], dtype=jnp.float32)
        else:
            w = jax.random.normal(sub, (in_dims[i], out_dims[i]),
                                  jnp.float32) * init_std
        layers.append(w)
    bias = jnp.zeros((1, control_dim), jnp.float32) if use_bias else None
    return layers, bias


if __name__ == "__main__":
    # Small feature dims consistent with the module; batch chosen so the tiled
    # Pallas path runs (>= min_pallas_rows), exercises fold padding (8200 is
    # not a multiple of fold) and a ragged last grid block, with a 2-step grid.
    batch = 8200
    state_dim = 16
    control_dim = 8
    hidden_dim = 32
    depth = 3
    use_bias = True

    key = jax.random.PRNGKey(0)
    key, k_state = jax.random.split(key)
    state = jax.random.normal(k_state, (batch, state_dim), jnp.float32)

    layers, bias = make_params(key, state_dim, control_dim, depth, hidden_dim,
                               init_std=0.01, use_bias=use_bias)

    out = linear_nn_state_controller(state, layers, bias)
    out = jax.block_until_ready(out)
    assert out.shape == (batch, control_dim)
    assert out.dtype == jnp.float32

    # References (same math as the PyTorch forward).
    K = compose_control_matrix(layers)
    # Matched-precision reference: bf16 operands, f32 accumulate (as kernel).
    ref_bf16 = jnp.dot(state.astype(jnp.bfloat16), K.astype(jnp.bfloat16),
                       preferred_element_type=jnp.float32)
    # Full-f32 reference (documented bf16 tolerance).
    ref_f32 = jnp.dot(state, K, precision=jax.lax.Precision.HIGHEST)
    if use_bias:
        ref_bf16 = ref_bf16 + bias
        ref_f32 = ref_f32 + bias

    assert jnp.allclose(out, ref_bf16, atol=1e-5, rtol=5e-3), \
        "mismatch vs matched-precision reference"
    assert jnp.allclose(out, ref_f32, atol=5e-5, rtol=5e-2), \
        "mismatch vs f32 reference"

    print("KERNEL_OK")
</pallas_src>

<mosaic_0001>
module attributes {stable_mosaic.version = 11 : i64} {
  func.func @_matmul_bias_kernel(%arg0: i32, %arg1: memref<144x512xf32, #tpu.memory_space<vmem>>, %arg2: memref<512x256xbf16, #tpu.memory_space<vmem>>, %arg3: memref<1x256xf32, #tpu.memory_space<vmem>>, %arg4: memref<144x256xf32, #tpu.memory_space<vmem>>) attributes {dimension_semantics = [#tpu.dimension_semantics<parallel>], iteration_bounds = array<i64: 2>, scalar_prefetch = 0 : i64, scratch_operands = 0 : i64, tpu.core_type = #tpu.core_type<tc>, window_params = [{transform_indices = @transform_0, window_bounds = array<i64: 144, 512>}, {pipeline_mode = #tpu.pipeline_mode<synchronous>, transform_indices = @transform_1, window_bounds = array<i64: 512, 256>}, {pipeline_mode = #tpu.pipeline_mode<synchronous>, transform_indices = @transform_2, window_bounds = array<i64: 1, 256>}, {transform_indices = @transform_3, window_bounds = array<i64: 144, 256>}]} {
    %c0 = arith.constant 0 : index
    %c0_0 = arith.constant 0 : index
    %0 = vector.load %arg1[%c0, %c0_0] : memref<144x512xf32, #tpu.memory_space<vmem>>, vector<144x512xf32>
    %1 = arith.truncf %0 : vector<144x512xf32> to vector<144x512xbf16>
    %c0_1 = arith.constant 0 : index
    %c0_2 = arith.constant 0 : index
    %2 = vector.load %arg2[%c0_1, %c0_2] : memref<512x256xbf16, #tpu.memory_space<vmem>>, vector<512x256xbf16>
    %cst = arith.constant dense<0.000000e+00> : vector<144x256xf32>
    %3 = tpu.matmul %1, %2, %cst {dimension_numbers = #tpu.dot_dimension_numbers<[1], [0], [0], [1], [0, 0, 1, 1], [], []>} : vector<144x512xbf16>, vector<512x256xbf16>, vector<144x256xf32> -> vector<144x256xf32>
    %c0_3 = arith.constant 0 : index
    %c0_4 = arith.constant 0 : index
    %4 = vector.load %arg3[%c0_3, %c0_4] : memref<1x256xf32, #tpu.memory_space<vmem>>, vector<1x256xf32>
    %5 = vector.broadcast %4 : vector<1x256xf32> to vector<144x256xf32>
    %6 = arith.addf %3, %5 : vector<144x256xf32>
    %c0_5 = arith.constant 0 : index
    %c0_6 = arith.constant 0 : index
    %7 = vector.load %arg4[%c0_5, %c0_6] : memref<144x256xf32, #tpu.memory_space<vmem>>, vector<144x256xf32>
    tpu.vector_store %arg4[%c0_5, %c0_6], %6 {strides = array<i32>} : memref<144x256xf32, #tpu.memory_space<vmem>>, vector<144x256xf32>,
    return
  }
  func.func @transform_0(%arg0: i32) -> (i32, i32) {
    %c0_i32 = arith.constant 0 : i32
    %c0_i32_0 = arith.constant 0 : i32
    return %arg0, %c0_i32 : i32, i32
  }
  func.func @transform_1(%arg0: i32) -> (i32, i32) {
    %c0_i32 = arith.constant 0 : i32
    %c0_i32_0 = arith.constant 0 : i32
    %c0_i32_1 = arith.constant 0 : i32
    return %c0_i32, %c0_i32_0 : i32, i32
  }
  func.func @transform_2(%arg0: i32) -> (i32, i32) {
    %c0_i32 = arith.constant 0 : i32
    %c0_i32_0 = arith.constant 0 : i32
    %c0_i32_1 = arith.constant 0 : i32
    return %c0_i32, %c0_i32_0 : i32, i32
  }
  func.func @transform_3(%arg0: i32) -> (i32, i32) {
    %c0_i32 = arith.constant 0 : i32
    %c0_i32_0 = arith.constant 0 : i32
    return %arg0, %c0_i32 : i32, i32
  }
}

</mosaic_0001>

<bundles_post_ra>
// kernel: tpu_custom_call.1
= control target key start
LH: loop header
LB: loop body
LE: loop exit
PB: predicated region body
PF: predicated region fallthrough
CT: control target
= control target key end

     0   :  { %8 = vsyncpa [#allocation3], 0  ;;  %s2462_s0 = inlined_call_operand.hbm [shape: f32[257,512], index: 0, kind: input, shape index: {}]   ;;  %s2463_s1 = inlined_call_operand.hbm [shape: bf16[512,256], index: 1, kind: input, shape index: {}]   ;;  %s2464_s2 = inlined_call_operand.hbm [shape: f32[1,256], index: 2, kind: input, shape index: {}]   ;;  %s2465_s3 = inlined_call_operand.hbm [shape: f32[257,256], index: 3, kind: output, shape index: {}]  }
   0x1   :  { %10 = vsyncpa [#allocation3 + $0x1], 0 }
   0x2   :  { %11 = vsyncpa [#allocation6], 0 }
   0x3   :  { %12 = vsyncpa [#allocation4], 0 }
   0x4   :  { %14 = vsyncpa [#allocation4 + $0x1], 0  ;;  %s1959_s12 = smov 0   ;;  %s1961_s13 = smov 0  }
   0x5   :  { %s1963_s14 = smov 0   ;;  %s1965_s15 = smov 0  }
   0x6 LB: > { %s1980_s16 = sadd.s32 4294967295, %s1927_s15   ;;  %s1326_s17 = sadd.s32 4294967294, %s1927_s15   ;;  %s1927_s15 = sphi %s1965_s15, %s2482_s15   ;;  %s1923_s14 = sphi %s1963_s14, %s2481_s14   ;;  %s1919_s13 = sphi %s1961_s13, %s2480_s13   ;;  %s1915_s12 = sphi %s1959_s12, %s2479_s12  }
   0x7   : > { %s1984_s18 = sadd.s32 1, %s1927_s15   ;;  %s27_s19 = sadd.s32 1, %s1923_s14 }
   0x8   : > { %s24_s20 = ssub.s32 %s1927_s15, %s1984_s18  ;;  %p34_p0 = scmp.ne.s32.totalorder %s1923_s14, %s1919_s13 }
   0x9   : > { %p25_p1 = scmp.eq.s32.totalorder %s24_s20, 0  ;;  %p35_p2 = scmp.eq.s32.totalorder %s1927_s15, 0 }
   0xa   : > { %p40_p3 = scmp.ne.s32.totalorder %s1919_s13, %s1915_s12  ;;  %p2467_p4 = scmp.eq.s32.totalorder %s1980_s16, 0 }
   0xb   : > { %s1996_s21 = scalar_select %p25_p1, %s1923_s14, %s27_s19  }
   0xc   : > { %p1998_p5 = por %p35_p2, %p34_p0  ;;  %p2004_p6 = por %p2467_p4, %p40_p3 }
   0xd   : > { %p106_p7 = scmp.eq.s32.totalorder %s1980_s16, 1  ;;  %p112_p8 = scmp.eq.s32.totalorder %s1326_s17, 1 }
   0xe   : > { %p1327_p9 = scmp.ge.s32.totalorder %s1927_s15, 1  ;;  %p119_p10 = scmp.lt.s32.totalorder %s1927_s15, 3 }
   0xf   : > { %p2011_p11 = por %p106_p7, %p34_p0  ;;  %p2015_p12 = por %p112_p8, %p40_p3 }
  0x10   : > { %p2019_p13 = pnand %p1327_p9, %p119_p10  ;;  %s130_s29 = sshll.u32 %s2463_s1, 4  ;;  %s131_s29 = int_to_ptr.hbm [resolvable:$true] %s130_s29 }
  0x11   : > { %s2471_s25 = scalar_select %p2015_p12, 1, 0 }
  0x12   : > { %p1691_p1 = pneg %p2019_p13  ;;  %s1929_s30 = smov [#allocation5]  }
  0x13   : > { %s132_s4 = sshll.u32 %s1929_s30, 4  ;;  %s145_s7 = sshll.u32 %s2464_s2, 4  ;;  %s133_s4 = int_to_ptr.vmem [resolvable:$true] %s132_s4  ;;  %s146_s7 = int_to_ptr.hbm [resolvable:$true] %s145_s7 }
  0x14   : > { %p1692_p0 = pnand %p1691_p1, %p2467_p4  ;;  %s1930_s8 = smov 128  }
  0x15   : > { %s1931_s9 = smov 8   ;;  %s1932_s10 = smov [#allocation7]  }
  0x16   : > { %1694 = dma.hbm_to_vmem [thread:$0]  (!%p1692_p0), %s131_s29, 8192, %s133_s4, [#allocation6], %s1930_s8, %s1930_s8, %s1931_s9  }
  0x17   : > { %s147_s11 = sshll.u32 %s1932_s10, 4  ;;  %p2466_p2 = scmp.ge.s32.totalorder %s1927_s15, 2  ;;  %s148_s11 = int_to_ptr.vmem [resolvable:$true] %s147_s11 }
  0x18   : > { %1697 = dma.hbm_to_vmem [thread:$0]  (!%p1692_p0), %s146_s7, 32, %s148_s11, [#allocation6]  }
  0x19   : > { %154 = sbr.rel (%p2466_p2) target bundleno = 68 (0x44), region = 24 }
  0x1e   : > { %157 = sbr.rel (!%p1998_p5) target bundleno = 68 (0x44), region = 28  ;;  %s158_s17 = sand.u32 (%p1998_p5), 1, %s1923_s14  }
  0x1f   : > { %s163_s19 = smul.u32 (%p1998_p5), 18, %s1927_s15  ;;  %s2043_s4 = scalar_lea.sflag (%p1998_p5), [#allocation3], %s158_s17 }
  0x20   : > { %s1678_s20 = smul.u32 (%p1998_p5), 576, %s158_s17 }
  0x21   : > { %s164_s27 = ssub.s32 (%p1998_p5), 33, %s163_s19 }
  0x22   : > { %p165_p3 = scmp.lt.s32.totalorder (%p1998_p5), %s164_s27, 18  ;;  %s162_s5 = scalar_lea.vmem (%p1998_p5), [#allocation2], %s1678_s20 }
  0x24   : > { %s2484_s27 = smov (!%p165_p3, %s164_s27), 18 }
  0x25   : > { %s1606_s28 = sshll.u32 %s2484_s27, 5 }
  0x26   : > { %s169_s29 = ssub.s32 576, %s1606_s28 }
  0x27   : > { %s170_s30 = sshll.u32 %s169_s29, 4 }
  0x28   : > { %171 = vsyncadd %s2043_s4, %s170_s30  ;;  %p2046_p5 = scmp.ne.s32.totalorder %s1606_s28, 0  ;;  %s1676_s6 = smul.u32 576, %s1927_s15 }
  0x29   : > { %s2051_s7 = sshll.u32 %s162_s5, 4  ;;  %s1337_s8 = sshll.u32 %s2484_s27, 9  ;;  %s180_s7 = int_to_ptr.vmem [resolvable:$true] %s2051_s7 }
  0x2a   : > { %s175_s11 = scalar_lea.hbm %s2462_s0, %s1676_s6  ;;  %s1809_s20 = sshrl.u32 %s1337_s8, 4 }
  0x2b   : > { %s177_s17 = sshll.u32 %s175_s11, 4  ;;  %s1818_s5 = scalar_lea.hbm %s2462_s0, 1056  ;;  %s2058_s17 = int_to_ptr.hbm [resolvable:$true] %s177_s17 }
  0x2c   : > { %s1807_s19 = sshra.s32 %s2058_s17, 4  ;;  %s1808_s19 = int_to_ptr.hbm [resolvable:$true] %s1807_s19 }
  0x2d   : > { %s1814_s28 = scalar_lea.hbm %s1808_s19, %s1809_s20  ;;  %p1819_p10 = scmp.lt.s32.totalorder %s1808_s19, %s2462_s0 }
  0x2e   : > { %p1815_p7 = scmp.ne.s32.totalorder %s1808_s19, %s1814_s28  ;;  %p1820_p1 = scmp.lt.s32.totalorder %s1818_s5, %s1814_s28 }
  0x30   : > { %p1816_p8 = pnand %p1815_p7, %p2046_p5  ;;  %p1821_p0 = por %p1820_p1, %p1819_p10 }
  0x32   : > { %p1817_p9 = pneg %p1816_p8 }
  0x34   : > { %p1822_p3 = pnand %p1821_p0, %p1817_p9 }
  0x36   : > { %1825 = shalt.err (!%p1822_p3)
}
  0x37   : > { %s1826_s10 = sshra.s32 %s180_s7, 4  ;;  %s1933_s29 = smov [#allocation2]   ;;  %s1827_s10 = int_to_ptr.vmem [resolvable:$true] %s1826_s10 }
  0x38   : > { %s1833_s11 = scalar_lea.vmem %s1827_s10, %s1809_s20  ;;  %s1837_s30 = scalar_lea.vmem %s1933_s29, 1152 }
  0x39   : > { %p1834_p7 = scmp.ne.s32.totalorder %s1827_s10, %s1833_s11  ;;  %p1839_p4 = scmp.lt.s32.totalorder %s1837_s30, %s1833_s11 }
  0x3b   : > { %p1835_p8 = pnand %p1834_p7, %p2046_p5 }
  0x3d   : > { %p1836_p2 = pneg %p1835_p8 }
  0x3f   : > { %p1841_p12 = pnand %p1839_p4, %p1836_p2 }
  0x41   : > { %1844 = shalt.err (!%p1841_p12)
}
  0x42   : > { %s1934_s19 = smov 512   ;;  %s1935_s28 = smov 32  }
  0x43   : > { %185 = dma.hbm_to_vmem [thread:$0]  (%p2046_p5), %s2058_s17, %s1337_s8, %s180_s7, %s2043_s4, %s1934_s19, %s1934_s19, %s1935_s28  }
  0x44 PF: > { %191 = sbr.rel (%p2019_p13) target bundleno = 561 (0x231), region = 32  ;;  %s2086_s20 = sand.u32 (!%p2019_p13), 1, %s1919_s13  }
  0x45   : > { %s1679_s5 = smul.u32 (!%p2019_p13), 576, %s2086_s20  ;;  %s194_s9 = scalar_lea.sflag (!%p2019_p13), [#allocation3], %s2086_s20 }
  0x47   : > { %s2090_s6 = scalar_lea.vmem (!%p2019_p13), [#allocation2], %s1679_s5 }
  0x49   : > { %1902 = dma.done.wait (%p2004_p6), %s194_s9, 9216  }
  0x4a   : > { %1904 = vsyncadd (%p2004_p6), %s194_s9, 4294958080  ;;  %p2474_p4 = scmp.eq.s32.totalorder %s1980_s16, 0 }
  0x4c   : > { %1906 = dma.done.wait (%p2474_p4), [#allocation6], 8224   ;;  %p2475_p12 = pmov %p2474_p4 }
  0x4d   : > { %v1399_v0 = vld [vmem:[#allocation5 + $0x70] sm:$0xf]  ;;  %v1624_v1 = vld [vmem:[#allocation5 + $0x74] sm:$0xf0]  ;;  %v1391_v11 = vld [vmem:[#allocation5 + $0x60] sm:$0xf] }
  0x4e   : > { %1908 = vsyncadd (%p2475_p12), [#allocation6], 4294959072  ;;  %v1463_v2 = vld [vmem:[#allocation5 + $0xf0] sm:$0xf]  ;;  %v1400_v3 = vor.u32 %v1624_v1, %v1399_v0  ;;  %v1640_v4 = vld [vmem:[#allocation5 + $0xf4] sm:$0xf0] }
  0x4f   : > { %v1527_v5 = vld [vmem:[#allocation5 + $0x170] sm:$0xf]  ;;  %v1656_v6 = vld [vmem:[#allocation5 + $0x174] sm:$0xf0]  ;;  %v1464_v7 = vor.u32 %v1640_v4, %v1463_v2  ;;  %v1622_v13 = vld [vmem:[#allocation5 + $0x64] sm:$0xf0] }
  0x50   : > { %v1528_v8 = vor.u32 %v1656_v6, %v1527_v5  ;;  %v1591_v9 = vld [vmem:[#allocation5 + $0x1f0] sm:$0xf]  ;;  %v1672_v10 = vld [vmem:[#allocation5 + $0x1f4] sm:$0xf0]  ;;  %741 = vmatpush.bf16.msra.mxu0 %v1400_v3  ;;  %v1455_v14 = vld [vmem:[#allocation5 + $0xe0] sm:$0xf]  ;;  %v1392_v16 = vor.u32 %v1622_v13, %v1391_v11 }
  0x51   : > { %v1592_v12 = vor.u32 %v1672_v10, %v1591_v9  ;;  %v1638_v15 = vld [vmem:[#allocation5 + $0xe4] sm:$0xf0]  ;;  %795 = vmatpush.bf16.msra.mxu1 %v1464_v7  ;;  %v1519_v18 = vld [vmem:[#allocation5 + $0x160] sm:$0xf]  ;;  %v1383_v23 = vld [vmem:[#allocation5 + $0x50] sm:$0xf] }
  0x52   : > { %849 = vmatpush.bf16.msra.mxu2 %v1528_v8  ;;  %v1456_v17 = vor.u32 %v1638_v15, %v1455_v14  ;;  %v1654_v19 = vld [vmem:[#allocation5 + $0x164] sm:$0xf0]  ;;  %v1583_v20 = vld [vmem:[#allocation5 + $0x1e0] sm:$0xf]  ;;  %v1620_v24 = vld [vmem:[#allocation5 + $0x54] sm:$0xf0] }
  0x53   : > { %903 = vmatpush.bf16.msra.mxu3 %v1592_v12  ;;  %v1520_v21 = vor.u32 %v1654_v19, %v1519_v18  ;;  %v1670_v22 = vld [vmem:[#allocation5 + $0x1e4] sm:$0xf0]  ;;  %v1447_v26 = vld [vmem:[#allocation5 + $0xd0] sm:$0xf]  ;;  %v1636_v27 = vld [vmem:[#allocation5 + $0xd4] sm:$0xf0]  ;;  %v1384_v29 = vor.u32 %v1620_v24, %v1383_v23 }
  0x54   : > { %v1584_v25 = vor.u32 %v1670_v22, %v1583_v20  ;;  %v1511_v28 = vld [vmem:[#allocation5 + $0x150] sm:$0xf]  ;;  %742 = vmatpush.bf16.msra.mxu0 %v1392_v16  ;;  %v1652_v30 = vld [vmem:[#allocation5 + $0x154] sm:$0xf0]  ;;  %v1448_v33 = vor.u32 %v1636_v27, %v1447_v26  ;;  %v1375_v35 = vld [vmem:[#allocation5 + $0x40] sm:$0xf] }
  0x55   : > { %v1575_v31 = vld [vmem:[#allocation5 + $0x1d0] sm:$0xf]  ;;  %v1668_v32 = vld [vmem:[#allocation5 + $0x1d4] sm:$0xf0]  ;;  %796 = vmatpush.bf16.msra.mxu1 %v1456_v17  ;;  %v1512_v34 = vor.u32 %v1652_v30, %v1511_v28  ;;  %v1618_v36 = vld [vmem:[#allocation5 + $0x44] sm:$0xf0] }
  0x56   : > { %850 = vmatpush.bf16.msra.mxu2 %v1520_v21  ;;  %v1439_v37 = vld [vmem:[#allocation5 + $0xc0] sm:$0xf]  ;;  %v1576_v38 = vor.u32 %v1668_v32, %v1575_v31  ;;  %v1634_v39 = vld [vmem:[#allocation5 + $0xc4] sm:$0xf0]  ;;  %v1376_v44 = vor.u32 %v1618_v36, %v1375_v35  ;;  %v1367_v47 = vld [vmem:[#allocation5 + $0x30] sm:$0xf] }
  0x57   : > { %904 = vmatpush.bf16.msra.mxu3 %v1584_v25  ;;  %v1503_v40 = vld [vmem:[#allocation5 + $0x140] sm:$0xf]  ;;  %v1650_v41 = vld [vmem:[#allocation5 + $0x144] sm:$0xf0]  ;;  %v1440_v45 = vor.u32 %v1634_v39, %v1439_v37  ;;  %v1616_v48 = vld [vmem:[#allocation5 + $0x34] sm:$0xf0] }
  0x58   : > { %v1567_v42 = vld [vmem:[#allocation5 + $0x1c0] sm:$0xf]  ;;  %v1666_v43 = vld [vmem:[#allocation5 + $0x1c4] sm:$0xf0]  ;;  %743 = vmatpush.bf16.msra.mxu0 %v1384_v29  ;;  %v1504_v46 = vor.u32 %v1650_v41, %v1503_v40  ;;  %v1431_v49 = vld [vmem:[#allocation5 + $0xb0] sm:$0xf]  ;;  %v1368_v56 = vor.u32 %v1616_v48, %v1367_v47 }
  0x59   : > { %797 = vmatpush.bf16.msra.mxu1 %v1448_v33  ;;  %v1568_v50 = vor.u32 %v1666_v43, %v1567_v42  ;;  %v1632_v51 = vld [vmem:[#allocation5 + $0xb4] sm:$0xf0]  ;;  %v1495_v52 = vld [vmem:[#allocation5 + $0x130] sm:$0xf]  ;;  %v1359_v59 = vld [vmem:[#allocation5 + $0x20] sm:$0xf] }
  0x5a   : > { %851 = vmatpush.bf16.msra.mxu2 %v1512_v34  ;;  %v1648_v53 = vld [vmem:[#allocation5 + $0x134] sm:$0xf0]  ;;  %v1559_v54 = vld [vmem:[#allocation5 + $0x1b0] sm:$0xf]  ;;  %v1432_v57 = vor.u32 %v1632_v51, %v1431_v49  ;;  %v1614_v60 = vld [vmem:[#allocation5 + $0x24] sm:$0xf0] }
  0x5b   : > { %905 = vmatpush.bf16.msra.mxu3 %v1576_v38  ;;  %v1664_v55 = vld [vmem:[#allocation5 + $0x1b4] sm:$0xf0]  ;;  %v1496_v58 = vor.u32 %v1648_v53, %v1495_v52  ;;  %v1423_v61 = vld [vmem:[#allocation5 + $0xa0] sm:$0xf]  ;;  %v1630_v63 = vld [vmem:[#allocation5 + $0xa4] sm:$0xf0]  ;;  %v1360_v4 = vor.u32 %v1614_v60, %v1359_v59 }
  0x5c   : > { %744 = vmatpush.bf16.msra.mxu0 %v1376_v44  ;;  %v1560_v62 = vor.u32 %v1664_v55, %v1559_v54  ;;  %v1487_v0 = vld [vmem:[#allocation5 + $0x120] sm:$0xf]  ;;  %v1646_v1 = vld [vmem:[#allocation5 + $0x124] sm:$0xf0]  ;;  %v1424_v5 = vor.u32 %v1630_v63, %v1423_v61  ;;  %v1351_v7 = vld [vmem:[#allocation5 + $0x10] sm:$0xf] }
  0x5d   : > { %798 = vmatpush.bf16.msra.mxu1 %v1440_v45  ;;  %v1551_v2 = vld [vmem:[#allocation5 + $0x1a0] sm:$0xf]  ;;  %v1662_v3 = vld [vmem:[#allocation5 + $0x1a4] sm:$0xf0]  ;;  %v1488_v6 = vor.u32 %v1646_v1, %v1487_v0  ;;  %v1612_v8 = vld [vmem:[#allocation5 + $0x14] sm:$0xf0] }
  0x5e   : > { %852 = vmatpush.bf16.msra.mxu2 %v1504_v46  ;;  %v1415_v9 = vld [vmem:[#allocation5 + $0x90] sm:$0xf]  ;;  %v1552_v10 = vor.u32 %v1662_v3, %v1551_v2  ;;  %v1628_v11 = vld [vmem:[#allocation5 + $0x94] sm:$0xf0]  ;;  %v1343_v16 = vld [vmem:[#allocation5] sm:$0xf]  ;;  %v1352_v17 = vor.u32 %v1612_v8, %v1351_v7 }
  0x5f   : > { %906 = vmatpush.bf16.msra.mxu3 %v1568_v50  ;;  %v1479_v12 = vld [vmem:[#allocation5 + $0x110] sm:$0xf]  ;;  %v1644_v13 = vld [vmem:[#allocation5 + $0x114] sm:$0xf0]  ;;  %v1610_v18 = vld [vmem:[#allocation5 + $0x4] sm:$0xf0]  ;;  %v1416_v21 = vor.u32 %v1628_v11, %v1415_v9 }
  0x60   : > { %745 = vmatpush.bf16.msra.mxu0 %v1368_v56  ;;  %v1543_v14 = vld [vmem:[#allocation5 + $0x190] sm:$0xf]  ;;  %v1660_v15 = vld [vmem:[#allocation5 + $0x194] sm:$0xf0]  ;;  %v1407_v19 = vld [vmem:[#allocation5 + $0x80] sm:$0xf]  ;;  %v1480_v22 = vor.u32 %v1644_v13, %v1479_v12  ;;  %v1344_v34 = vor.u32 %v1610_v18, %v1343_v16 }
  0x61   : > { %799 = vmatpush.bf16.msra.mxu1 %v1432_v57  ;;  %v1626_v20 = vld [vmem:[#allocation5 + $0x84] sm:$0xf0]  ;;  %v1471_v23 = vld [vmem:[#allocation5 + $0x100] sm:$0xf]  ;;  %v1544_v26 = vor.u32 %v1660_v15, %v1543_v14  ;;  %v1655_v32 = vld [vmem:[#allocation5 + $0x174] sm:$0xf] }
  0x62   : > { %853 = vmatpush.bf16.msra.mxu2 %v1496_v58  ;;  %v1642_v24 = vld [vmem:[#allocation5 + $0x104] sm:$0xf0]  ;;  %v1535_v25 = vld [vmem:[#allocation5 + $0x180] sm:$0xf]  ;;  %v1529_v33 = vld [vmem:[#allocation5 + $0x178] sm:$0xf0]  ;;  %v1408_v38 = vor.u32 %v1626_v20, %v1407_v19 }
  0x63   : > { %907 = vmatpush.bf16.msra.mxu3 %v1560_v62  ;;  %v1658_v27 = vld [vmem:[#allocation5 + $0x184] sm:$0xf0]  ;;  %v243_v28 = vld [vmem:[%s2090_s6] sm:$0xff]  ;;  %v245_v35 = vld [vmem:[%s2090_s6 + $0x10] sm:$0xff]  ;;  %v1472_v39 = vor.u32 %v1642_v24, %v1471_v23  ;;  %v1532_v44 = vor.u32 %v1655_v32, %v1529_v33  ;;  %s1680_s23 = smul.u32 288, %s2086_s20  ;;  %s1210_s27 = scalar_lea.sflag [#allocation4], %s2086_s20 }
  0x64   : > { %746 = vmatpush.bf16.msra.mxu0 %v1360_v4  ;;  %v247_v29 = vld [vmem:[%s2090_s6 + $0x20] sm:$0xff]  ;;  %v244_v30 = vld [vmem:[%s2090_s6 + $0x8] sm:$0xff]  ;;  %v1671_v36 = vld [vmem:[#allocation5 + $0x1f4] sm:$0xf]  ;;  %v1536_v43 = vor.u32 %v1658_v27, %v1535_v25  ;;  %s1217_s4 = smul.u32 (%p2011_p11), 18, %s1980_s16 }
  0x65   : > { %800 = vmatpush.bf16.msra.mxu1 %v1424_v5  ;;  %v248_v31 = vld [vmem:[%s2090_s6 + $0x28] sm:$0xff]  ;;  %v1593_v37 = vld [vmem:[#allocation5 + $0x1f8] sm:$0xf0]  ;;  %v249_v40 = vld [vmem:[%s2090_s6 + $0x30] sm:$0xff]  ;;  %v2108_v48 = vpack.c.bf16 %v247_v29, %v243_v28  ;;  %s2288_s26 = scalar_lea.vmem [#allocation8], %s1680_s23 }
  0x66   : > { %854 = vmatpush.bf16.msra.mxu2 %v1488_v6  ;;  %v246_v41 = vld [vmem:[%s2090_s6 + $0x18] sm:$0xff]  ;;  %v1623_v45 = vld [vmem:[#allocation5 + $0x74] sm:$0xf]  ;;  %v1596_v49 = vor.u32 %v1671_v36, %v1593_v37  ;;  %v1653_v51 = vld [vmem:[#allocation5 + $0x164] sm:$0xf]  ;;  %v2110_v53 = vpack.c.bf16 %v248_v31, %v244_v30  ;;  %v2112_v54 = vpack.c.bf16 %v249_v40, %v245_v35  ;;  %s1218_s22 = ssub.s32 (%p2011_p11), 33, %s1217_s4 }
  0x67   : > { %908 = vmatpush.bf16.msra.mxu3 %v1552_v10  ;;  %v250_v42 = vld [vmem:[%s2090_s6 + $0x38] sm:$0xff]  ;;  %v1639_v47 = vld [vmem:[#allocation5 + $0xf4] sm:$0xf]  ;;  %v1521_v52 = vld [vmem:[#allocation5 + $0x168] sm:$0xf0]  ;;  %p1219_p6 = scmp.lt.s32.totalorder (%p2011_p11), %s1218_s22, 18 }
  0x68   : > { %747 = vmatpush.bf16.msra.mxu0 %v1352_v17  ;;  %v1401_v46 = vld [vmem:[#allocation5 + $0x78] sm:$0xf0]  ;;  %v1669_v55 = vld [vmem:[#allocation5 + $0x1e4] sm:$0xf]  ;;  %v1585_v56 = vld [vmem:[#allocation5 + $0x1e8] sm:$0xf0]  ;;  %v2114_v57 = vpack.c.bf16 %v250_v42, %v246_v41  ;;  %v1524_v60 = vor.u32 %v1653_v51, %v1521_v52 }
  0x69   : > { %801 = vmatpush.bf16.msra.mxu1 %v1416_v21  ;;  %v1465_v50 = vld [vmem:[#allocation5 + $0xf8] sm:$0xf0]  ;;  %v1404_v58 = vor.u32 %v1623_v45, %v1401_v46  ;;  %v1621_v61 = vld [vmem:[#allocation5 + $0x64] sm:$0xf]  ;;  %v1393_v62 = vld [vmem:[#allocation5 + $0x68] sm:$0xf0]  ;;  %v1588_v63 = vor.u32 %v1669_v55, %v1585_v56 }
  0x6a   : > { %855 = vmatpush.bf16.msra.mxu2 %v1480_v22  ;;  %v1468_v59 = vor.u32 %v1639_v47, %v1465_v50  ;;  %v1637_v0 = vld [vmem:[#allocation5 + $0xe4] sm:$0xf]  ;;  %v1457_v1 = vld [vmem:[#allocation5 + $0xe8] sm:$0xf0]  ;;  %v1396_v2 = vor.u32 %v1621_v61, %v1393_v62  ;;  %v1651_v3 = vld [vmem:[#allocation5 + $0x154] sm:$0xf] }
  0x6b   : > { %909 = vmatpush.bf16.msra.mxu3 %v1544_v26  ;;  %v1513_v4 = vld [vmem:[#allocation5 + $0x158] sm:$0xf0]  ;;  %v1619_v5 = vld [vmem:[#allocation5 + $0x54] sm:$0xf]  ;;  %v1460_v6 = vor.u32 %v1637_v0, %v1457_v1  ;;  %v251_v16 = vld [vmem:[%s2090_s6 + $0x40] sm:$0xff] }
  0x6c   : > { %748 = vmatpush.bf16.msra.mxu0 %v1344_v34  ;;  %v1516_v7 = vor.u32 %v1651_v3, %v1513_v4  ;;  %v1385_v8 = vld [vmem:[#allocation5 + $0x58] sm:$0xf0]  ;;  %v1667_v9 = vld [vmem:[#allocation5 + $0x1d4] sm:$0xf]  ;;  %v255_v17 = vld [vmem:[%s2090_s6 + $0x60] sm:$0xff] }
  0x6d   : > { %802 = vmatpush.bf16.msra.mxu1 %v1408_v38  ;;  %v1577_v10 = vld [vmem:[#allocation5 + $0x1d8] sm:$0xf0]  ;;  %v1635_v12 = vld [vmem:[#allocation5 + $0xd4] sm:$0xf]  ;;  %v1388_v14 = vor.u32 %v1619_v5, %v1385_v8  ;;  %v252_v18 = vld [vmem:[%s2090_s6 + $0x48] sm:$0xff]  ;;  %v2128_v24 = vpack.c.bf16 %v255_v17, %v251_v16 }
  0x6e   : > { %856 = vmatpush.bf16.msra.mxu2 %v1472_v39  ;;  %v1580_v11 = vor.u32 %v1667_v9, %v1577_v10  ;;  %v1449_v13 = vld [vmem:[#allocation5 + $0xd8] sm:$0xf0]  ;;  %v256_v19 = vld [vmem:[%s2090_s6 + $0x68] sm:$0xff]  ;;  %v253_v20 = vld [vmem:[%s2090_s6 + $0x50] sm:$0xff] }
  0x6f   : > { %910 = vmatpush.bf16.msra.mxu3 %v1536_v43  ;;  %749 = vmatmul.bf16.vlgmr.msra.gmra.mxu0 %v2108_v48  ;;  %v1452_v15 = vor.u32 %v1635_v12, %v1449_v13  ;;  %v257_v21 = vld [vmem:[%s2090_s6 + $0x70] sm:$0xff]  ;;  %v254_v22 = vld [vmem:[%s2090_s6 + $0x58] sm:$0xff]  ;;  %v2130_v25 = vpack.c.bf16 %v256_v19, %v252_v18  ;;  %v1649_v28 = vld [vmem:[#allocation5 + $0x144] sm:$0xf] }
  0x70   : > { %803 = vmatmul.bf16.vlgmr.msra.gmra.mxu1 %v2110_v53  ;;  %957 = vmatpush.bf16.msrb.mxu0 %v1404_v58  ;;  %v258_v23 = vld [vmem:[%s2090_s6 + $0x78] sm:$0xff]  ;;  %v2132_v26 = vpack.c.bf16 %v257_v21, %v253_v20  ;;  %v1505_v29 = vld [vmem:[#allocation5 + $0x148] sm:$0xf0]  ;;  %v1617_v30 = vld [vmem:[#allocation5 + $0x44] sm:$0xf] }
  0x71   : > { %857 = vmatmul.bf16.vlgmr.msra.gmra.mxu2 %v2112_v54  ;;  %1011 = vmatpush.bf16.msrb.mxu1 %v1468_v59  ;;  %v2134_v27 = vpack.c.bf16 %v258_v23, %v254_v22  ;;  %v1508_v31 = vor.u32 %v1649_v28, %v1505_v29  ;;  %v1377_v32 = vld [vmem:[#allocation5 + $0x48] sm:$0xf0]  ;;  %v1665_v33 = vld [vmem:[#allocation5 + $0x1c4] sm:$0xf]  ;;  %v265_v45 = vld [vmem:[%s2090_s6 + $0xb0] sm:$0xff] }
  0x72   : > { %1065 = vmatpush.bf16.msrb.mxu2 %v1532_v44  ;;  %911 = vmatmul.bf16.vlgmr.msra.gmra.mxu3 %v2114_v57  ;;  %v1569_v34 = vld [vmem:[#allocation5 + $0x1c8] sm:$0xf0]  ;;  %v1380_v35 = vor.u32 %v1617_v30, %v1377_v32  ;;  %v1633_v37 = vld [vmem:[#allocation5 + $0xc4] sm:$0xf]  ;;  %v261_v44 = vld [vmem:[%s2090_s6 + $0x90] sm:$0xff] }
  0x73   : > { %1119 = vmatpush.bf16.msrb.mxu3 %v1596_v49  ;;  %v1572_v36 = vor.u32 %v1665_v33, %v1569_v34  ;;  %v1441_v38 = vld [vmem:[#allocation5 + $0xc8] sm:$0xf0]  ;;  %v259_v40 = vld [vmem:[%s2090_s6 + $0x80] sm:$0xff]  ;;  %v262_v46 = vld [vmem:[%s2090_s6 + $0x98] sm:$0xff]  ;;  %v2152_v51 = vpack.c.bf16 %v265_v45, %v261_v44 }
  0x74   : > { %958 = vmatpush.bf16.msrb.mxu0 %v1396_v2  ;;  %v1444_v39 = vor.u32 %v1633_v37, %v1441_v38  ;;  %v263_v41 = vld [vmem:[%s2090_s6 + $0xa0] sm:$0xff]  ;;  %v260_v42 = vld [vmem:[%s2090_s6 + $0x88] sm:$0xff]  ;;  %v266_v47 = vld [vmem:[%s2090_s6 + $0xb8] sm:$0xff] }
  0x75   : > { %1012 = vmatpush.bf16.msrb.mxu1 %v1460_v6  ;;  %v264_v43 = vld [vmem:[%s2090_s6 + $0xa8] sm:$0xff]  ;;  %v2148_v49 = vpack.c.bf16 %v263_v41, %v259_v40  ;;  %v2154_v52 = vpack.c.bf16 %v266_v47, %v262_v46  ;;  %v1647_v55 = vld [vmem:[#allocation5 + $0x134] sm:$0xf]  ;;  %v1497_v56 = vld [vmem:[#allocation5 + $0x138] sm:$0xf0] }
  0x76   : > { %1066 = vmatpush.bf16.msrb.mxu2 %v1524_v60  ;;  %v2150_v50 = vpack.c.bf16 %v264_v43, %v260_v42  ;;  %v1615_v58 = vld [vmem:[#allocation5 + $0x34] sm:$0xf]  ;;  %v1500_v59 = vor.u32 %v1647_v55, %v1497_v56  ;;  %v1369_v60 = vld [vmem:[#allocation5 + $0x38] sm:$0xf0]  ;;  %v267_v4 = vld [vmem:[%s2090_s6 + $0xc0] sm:$0xff] }
  0x77   : > { %1120 = vmatpush.bf16.msrb.mxu3 %v1588_v63  ;;  %v1663_v61 = vld [vmem:[#allocation5 + $0x1b4] sm:$0xf]  ;;  %v1561_v62 = vld [vmem:[#allocation5 + $0x1b8] sm:$0xf0]  ;;  %v1372_v63 = vor.u32 %v1615_v58, %v1369_v60  ;;  %v271_v5 = vld [vmem:[%s2090_s6 + $0xe0] sm:$0xff] }
  0x78   : > { %959 = vmatpush.bf16.msrb.mxu0 %v1388_v14  ;;  %v1564_v0 = vor.u32 %v1663_v61, %v1561_v62  ;;  %v1631_v1 = vld [vmem:[#allocation5 + $0xb4] sm:$0xf]  ;;  %v1433_v2 = vld [vmem:[#allocation5 + $0xb8] sm:$0xf0]  ;;  %v268_v6 = vld [vmem:[%s2090_s6 + $0xc8] sm:$0xff]  ;;  %v2168_v12 = vpack.c.bf16 %v271_v5, %v267_v4 }
  0x79   : > { %1013 = vmatpush.bf16.msrb.mxu1 %v1452_v15  ;;  %v1436_v3 = vor.u32 %v1631_v1, %v1433_v2  ;;  %v269_v8 = vld [vmem:[%s2090_s6 + $0xd0] sm:$0xff]  ;;  %v270_v10 = vld [vmem:[%s2090_s6 + $0xd8] sm:$0xff]  ;;  %v1645_v16 = vld [vmem:[#allocation5 + $0x124] sm:$0xf] }
  0x7a   : > { %1067 = vmatpush.bf16.msrb.mxu2 %v1516_v7  ;;  %v272_v7 = vld [vmem:[%s2090_s6 + $0xe8] sm:$0xff]  ;;  %v273_v9 = vld [vmem:[%s2090_s6 + $0xf0] sm:$0xff]  ;;  %v1613_v18 = vld [vmem:[#allocation5 + $0x24] sm:$0xf] }
  0x7b   : > { %1121 = vmatpush.bf16.msrb.mxu3 %v1580_v11  ;;  %v274_v11 = vld [vmem:[%s2090_s6 + $0xf8] sm:$0xff]  ;;  %v2170_v13 = vpack.c.bf16 %v272_v7, %v268_v6  ;;  %v2172_v14 = vpack.c.bf16 %v273_v9, %v269_v8  ;;  %v1489_v17 = vld [vmem:[#allocation5 + $0x128] sm:$0xf0]  ;;  %v1661_v21 = vld [vmem:[#allocation5 + $0x1a4] sm:$0xf] }
  0x7c   : > { %960 = vmatpush.bf16.msrb.mxu0 %v1380_v35  ;;  %v2174_v15 = vpack.c.bf16 %v274_v11, %v270_v10  ;;  %v1492_v19 = vor.u32 %v1645_v16, %v1489_v17  ;;  %v1361_v20 = vld [vmem:[#allocation5 + $0x28] sm:$0xf0]  ;;  %v1629_v29 = vld [vmem:[#allocation5 + $0xa4] sm:$0xf]  ;;  %v281_v37 = vld [vmem:[%s2090_s6 + $0x130] sm:$0xff] }
  0x7d   : > { %1014 = vmatpush.bf16.msrb.mxu1 %v1444_v39  ;;  %v1553_v22 = vld [vmem:[#allocation5 + $0x1a8] sm:$0xf0]  ;;  %v1364_v23 = vor.u32 %v1613_v18, %v1361_v20  ;;  %v275_v32 = vld [vmem:[%s2090_s6 + $0x100] sm:$0xff]  ;;  %v278_v38 = vld [vmem:[%s2090_s6 + $0x118] sm:$0xff] }
  0x7e   : > { %1068 = vmatpush.bf16.msrb.mxu2 %v1508_v31  ;;  %v1556_v28 = vor.u32 %v1661_v21, %v1553_v22  ;;  %v1425_v30 = vld [vmem:[#allocation5 + $0xa8] sm:$0xf0]  ;;  %v279_v33 = vld [vmem:[%s2090_s6 + $0x120] sm:$0xff]  ;;  %v282_v39 = vld [vmem:[%s2090_s6 + $0x138] sm:$0xff] }
  0x7f   : > { %754 = vmatmul.bf16.gmra.mxu0 %v2128_v24  ;;  %1122 = vmatpush.bf16.msrb.mxu3 %v1572_v36  ;;  %v1428_v31 = vor.u32 %v1629_v29, %v1425_v30  ;;  %v276_v34 = vld [vmem:[%s2090_s6 + $0x108] sm:$0xff]  ;;  %v277_v36 = vld [vmem:[%s2090_s6 + $0x110] sm:$0xff]  ;;  %v2188_v40 = vpack.c.bf16 %v279_v33, %v275_v32  ;;  %v2194_v43 = vpack.c.bf16 %v282_v39, %v278_v38  ;;  %v1481_v45 = vld [vmem:[#allocation5 + $0x118] sm:$0xf0] }
  0x80   : > { %808 = vmatmul.bf16.gmra.mxu1 %v2130_v25  ;;  %961 = vmatpush.bf16.msrb.mxu0 %v1372_v63  ;;  %v280_v35 = vld [vmem:[%s2090_s6 + $0x128] sm:$0xff]  ;;  %v2192_v42 = vpack.c.bf16 %v281_v37, %v277_v36  ;;  %v1643_v44 = vld [vmem:[#allocation5 + $0x114] sm:$0xf]  ;;  %v1353_v55 = vld [vmem:[#allocation5 + $0x18] sm:$0xf0] }
  0x81   : > { %862 = vmatmul.bf16.gmra.mxu2 %v2132_v26  ;;  %1015 = vmatpush.bf16.msrb.mxu1 %v1436_v3  ;;  %v2190_v41 = vpack.c.bf16 %v280_v35, %v276_v34  ;;  %v1611_v46 = vld [vmem:[#allocation5 + $0x14] sm:$0xf]  ;;  %v1484_v47 = vor.u32 %v1643_v44, %v1481_v45  ;;  %v1545_v58 = vld [vmem:[#allocation5 + $0x198] sm:$0xf0]  ;;  %v283_v61 = vld [vmem:[%s2090_s6 + $0x140] sm:$0xff] }
  0x82   : > { %916 = vmatmul.bf16.gmra.mxu3 %v2134_v27  ;;  %1069 = vmatpush.bf16.msrb.mxu2 %v1500_v59  ;;  %v1659_v56 = vld [vmem:[#allocation5 + $0x194] sm:$0xf]  ;;  %v1356_v59 = vor.u32 %v1611_v46, %v1353_v55  ;;  %v287_v62 = vld [vmem:[%s2090_s6 + $0x160] sm:$0xff]  ;;  %v284_v63 = vld [vmem:[%s2090_s6 + $0x148] sm:$0xff] }
  0x83   : > { %1123 = vmatpush.bf16.msrb.mxu3 %v1564_v0  ;;  %v1548_v60 = vor.u32 %v1659_v56, %v1545_v58  ;;  %v288_v0 = vld [vmem:[%s2090_s6 + $0x168] sm:$0xff]  ;;  %v285_v1 = vld [vmem:[%s2090_s6 + $0x150] sm:$0xff]  ;;  %v286_v3 = vld [vmem:[%s2090_s6 + $0x158] sm:$0xff]  ;;  %v2208_v5 = vpack.c.bf16 %v287_v62, %v283_v61 }
  0x84   : > { %962 = vmatpush.bf16.msrb.mxu0 %v1364_v23  ;;  %v289_v2 = vld [vmem:[%s2090_s6 + $0x170] sm:$0xff]  ;;  %v290_v4 = vld [vmem:[%s2090_s6 + $0x178] sm:$0xff]  ;;  %v2210_v6 = vpack.c.bf16 %v288_v0, %v284_v63  ;;  %v291_v16 = vld [vmem:[%s2090_s6 + $0x180] sm:$0xff] }
  0x85   : > { %1016 = vmatpush.bf16.msrb.mxu1 %v1428_v31  ;;  %v2212_v7 = vpack.c.bf16 %v289_v2, %v285_v1  ;;  %v2214_v8 = vpack.c.bf16 %v290_v4, %v286_v3  ;;  %v1627_v9 = vld [vmem:[#allocation5 + $0x94] sm:$0xf]  ;;  %v1417_v10 = vld [vmem:[#allocation5 + $0x98] sm:$0xf0]  ;;  %v295_v17 = vld [vmem:[%s2090_s6 + $0x1a0] sm:$0xff] }
  0x86   : > { %1070 = vmatpush.bf16.msrb.mxu2 %v1492_v19  ;;  %v1420_v11 = vor.u32 %v1627_v9, %v1417_v10  ;;  %v292_v18 = vld [vmem:[%s2090_s6 + $0x188] sm:$0xff]  ;;  %v293_v20 = vld [vmem:[%s2090_s6 + $0x190] sm:$0xff]  ;;  %v294_v22 = vld [vmem:[%s2090_s6 + $0x198] sm:$0xff] }
  0x87   : > { %1124 = vmatpush.bf16.msrb.mxu3 %v1556_v28  ;;  %v296_v19 = vld [vmem:[%s2090_s6 + $0x1a8] sm:$0xff]  ;;  %v297_v21 = vld [vmem:[%s2090_s6 + $0x1b0] sm:$0xff]  ;;  %v298_v23 = vld [vmem:[%s2090_s6 + $0x1b8] sm:$0xff]  ;;  %v2228_v28 = vpack.c.bf16 %v295_v17, %v291_v16 }
  0x88   : > { %963 = vmatpush.bf16.msrb.mxu0 %v1356_v59  ;;  %v2230_v29 = vpack.c.bf16 %v296_v19, %v292_v18  ;;  %v2232_v30 = vpack.c.bf16 %v297_v21, %v293_v20  ;;  %v2234_v31 = vpack.c.bf16 %v298_v23, %v294_v22  ;;  %v1641_v32 = vld [vmem:[#allocation5 + $0x104] sm:$0xf]  ;;  %v1473_v33 = vld [vmem:[#allocation5 + $0x108] sm:$0xf0]  ;;  %v305_v61 = vld [vmem:[%s2090_s6 + $0x1f0] sm:$0xff] }
  0x89   : > { %1017 = vmatpush.bf16.msrb.mxu1 %v1420_v11  ;;  %v1476_v34 = vor.u32 %v1641_v32, %v1473_v33  ;;  %v1609_v35 = vld [vmem:[#allocation5 + $0x4] sm:$0xf]  ;;  %v1345_v36 = vld [vmem:[#allocation5 + $0x8] sm:$0xf0]  ;;  %v302_v62 = vld [vmem:[%s2090_s6 + $0x1d8] sm:$0xff] }
  0x8a   : > { %1071 = vmatpush.bf16.msrb.mxu2 %v1484_v47  ;;  %v1348_v37 = vor.u32 %v1609_v35, %v1345_v36  ;;  %v1657_v38 = vld [vmem:[#allocation5 + $0x184] sm:$0xf]  ;;  %v1537_v39 = vld [vmem:[#allocation5 + $0x188] sm:$0xf0]  ;;  %v306_v63 = vld [vmem:[%s2090_s6 + $0x1f8] sm:$0xff] }
  0x8b   : > { %1125 = vmatpush.bf16.msrb.mxu3 %v1548_v60  ;;  %v1625_v44 = vld [vmem:[#allocation5 + $0x84] sm:$0xf]  ;;  %v1540_v45 = vor.u32 %v1657_v38, %v1537_v39  ;;  %v1409_v46 = vld [vmem:[#allocation5 + $0x88] sm:$0xf0]  ;;  %v301_v60 = vld [vmem:[%s2090_s6 + $0x1d0] sm:$0xff]  ;;  %v2254_v3 = vpack.c.bf16 %v306_v63, %v302_v62 }
  0x8c   : > { %964 = vmatpush.bf16.msrb.mxu0 %v1348_v37  ;;  %v1412_v47 = vor.u32 %v1625_v44, %v1409_v46  ;;  %v299_v55 = vld [vmem:[%s2090_s6 + $0x1c0] sm:$0xff]  ;;  %v300_v58 = vld [vmem:[%s2090_s6 + $0x1c8] sm:$0xff]  ;;  %v2252_v2 = vpack.c.bf16 %v305_v61, %v301_v60  ;;  %v309_v18 = vld [vmem:[%s2090_s6 + $0x210] sm:$0xff] }
  0x8d   : > { %v303_v56 = vld [vmem:[%s2090_s6 + $0x1e0] sm:$0xff]  ;;  %v304_v59 = vld [vmem:[%s2090_s6 + $0x1e8] sm:$0xff]  ;;  %v313_v19 = vld [vmem:[%s2090_s6 + $0x230] sm:$0xff] }
  0x8e   : > { %1072 = vmatpush.bf16.msrb.mxu2 %v1476_v34  ;;  %1018 = vmatpush.bf16.msrb.mxu1 %v1412_v47  ;;  %v2248_v0 = vpack.c.bf16 %v303_v56, %v299_v55  ;;  %v2250_v1 = vpack.c.bf16 %v304_v59, %v300_v58  ;;  %v2260_v4 = vld [vmem:[#allocation7] sm:$0x3]  ;;  %v308_v11 = vld [vmem:[%s2090_s6 + $0x208] sm:$0xff]  ;;  %v310_v20 = vld [vmem:[%s2090_s6 + $0x218] sm:$0xff]  ;;  %v2277_v33 = vpack.c.bf16 %v313_v19, %v309_v18 }
  0x8f   : > { %759 = vmatmul.bf16.gmra.mxu0 %v2148_v49  ;;  %1126 = vmatpush.bf16.msrb.mxu3 %v1540_v45  ;;  %v307_v9 = vld [vmem:[%s2090_s6 + $0x200] sm:$0xff]  ;;  %v2266_v16 = vperm.slane %v2260_v4, 0  ;;  %v312_v17 = vld [vmem:[%s2090_s6 + $0x228] sm:$0xff]  ;;  %v314_v21 = vld [vmem:[%s2090_s6 + $0x238] sm:$0xff] }
  0x90   : > { %813 = vmatmul.bf16.gmra.mxu1 %v2150_v50  ;;  %v311_v10 = vld [vmem:[%s2090_s6 + $0x220] sm:$0xff]  ;;  %v2275_v32 = vpack.c.bf16 %v312_v17, %v308_v11  ;;  %v2280_v36 = vpack.c.bf16 %v314_v21, %v310_v20 }
  0x91   : > { %867 = vmatmul.bf16.gmra.mxu2 %v2152_v51  ;;  %v2273_v22 = vpack.c.bf16 %v311_v10, %v307_v9 }
  0x92   : > { %921 = vmatmul.bf16.gmra.mxu3 %v2154_v52 }
  0x9f   : > { %764 = vmatmul.bf16.gmra.mxu0 %v2168_v12 }
  0xa0   : > { %818 = vmatmul.bf16.gmra.mxu1 %v2170_v13 }
  0xa1   : > { %872 = vmatmul.bf16.gmra.mxu2 %v2172_v14 }
  0xa2   : > { %926 = vmatmul.bf16.gmra.mxu3 %v2174_v15 }
  0xaf   : > { %769 = vmatmul.bf16.gmra.mxu0 %v2188_v40 }
  0xb0   : > { %823 = vmatmul.bf16.gmra.mxu1 %v2190_v41 }
  0xb1   : > { %877 = vmatmul.bf16.gmra.mxu2 %v2192_v42 }
  0xb2   : > { %931 = vmatmul.bf16.gmra.mxu3 %v2194_v43 }
  0xbf   : > { %774 = vmatmul.bf16.gmra.mxu0 %v2208_v5 }
  0xc0   : > { %828 = vmatmul.bf16.gmra.mxu1 %v2210_v6 }
  0xc1   : > { %882 = vmatmul.bf16.gmra.mxu2 %v2212_v7 }
  0xc2   : > { %936 = vmatmul.bf16.gmra.mxu3 %v2214_v8 }
  0xcf   : > { %779 = vmatmul.bf16.gmra.mxu0 %v2228_v28 }
  0xd0   : > { %833 = vmatmul.bf16.gmra.mxu1 %v2230_v29 }
  0xd1   : > { %887 = vmatmul.bf16.gmra.mxu2 %v2232_v30 }
  0xd2   : > { %941 = vmatmul.bf16.gmra.mxu3 %v2234_v31 }
  0xdf   : > { %784 = vmatmul.bf16.gmra.mxu0 %v2248_v0 }
  0xe0   : > { %838 = vmatmul.bf16.gmra.mxu1 %v2250_v1 }
  0xe1   : > { %892 = vmatmul.bf16.gmra.mxu2 %v2252_v2 }
  0xe2   : > { %946 = vmatmul.bf16.gmra.mxu3 %v2254_v3 }
  0xec   : > { %v750_v23 = vpop.f32.mrf.mxu0 }
  0xed   : > { %v751_v34 = vadd.f32 %v750_v23, %v2266_v16  ;;  %v804_v35 = vpop.f32.mrf.mxu1 }
  0xef   : > { %789 = vmatmul.bf16.gmra.mxu0 %v2273_v22  ;;  %v805_v37 = vadd.f32 %v804_v35, %v751_v34 }
  0xf0   : > { %843 = vmatmul.bf16.gmra.mxu1 %v2275_v32 }
  0xf1   : > { %897 = vmatmul.bf16.gmra.mxu2 %v2277_v33 }
  0xf2   : > { %951 = vmatmul.bf16.gmra.mxu3 %v2280_v36 }
  0xf4   : > { %v858_v38 = vpop.f32.mrf.mxu2  ;;  %v752_v45 = vpop.f32.mrf.mxu0 }
  0xf5   : > { %v859_v39 = vadd.f32 %v858_v38, %v805_v37  ;;  %v912_v44 = vpop.f32.mrf.mxu3  ;;  %v806_v46 = vpop.f32.mrf.mxu1  ;;  %v753_v55 = vadd.f32 %v752_v45, %v2266_v16 }
  0xf7   : > { %v913_v47 = vadd.f32 %v912_v44, %v859_v39  ;;  %v807_v56 = vadd.f32 %v806_v46, %v753_v55 }
  0xf9   : > { %1173 = vst [vmem:[%s2288_s26] sm:$0xff] %v913_v47 }
  0xfc   : > { %v860_v58 = vpop.f32.mrf.mxu2  ;;  %v755_v61 = vpop.f32.mrf.mxu0 }
  0xfd   : > { %v861_v59 = vadd.f32 %v860_v58, %v807_v56  ;;  %v914_v60 = vpop.f32.mrf.mxu3  ;;  %v756_v62 = vadd.f32 %v755_v61, %v2266_v16  ;;  %v809_v63 = vpop.f32.mrf.mxu1 }
  0xff   : > { %v915_v9 = vadd.f32 %v914_v60, %v861_v59  ;;  %965 = vmatmul.bf16.vlgmr.msrb.gmra.mxu0 %v2108_v48  ;;  %v810_v10 = vadd.f32 %v809_v63, %v756_v62 }
 0x100   : > { %1019 = vmatmul.bf16.vlgmr.msrb.gmra.mxu1 %v2110_v53 }
 0x101   : > { %1175 = vst [vmem:[%s2288_s26 + $0x10] sm:$0xff] %v915_v9  ;;  %1073 = vmatmul.bf16.vlgmr.msrb.gmra.mxu2 %v2112_v54 }
 0x102   : > { %1127 = vmatmul.bf16.vlgmr.msrb.gmra.mxu3 %v2114_v57 }
 0x104   : > { %v863_v11 = vpop.f32.mrf.mxu2  ;;  %v757_v19 = vpop.f32.mrf.mxu0 }
 0x105   : > { %v864_v17 = vadd.f32 %v863_v11, %v810_v10  ;;  %v917_v18 = vpop.f32.mrf.mxu3  ;;  %v811_v20 = vpop.f32.mrf.mxu1  ;;  %v758_v23 = vadd.f32 %v757_v19, %v2266_v16 }
 0x107   : > { %v918_v21 = vadd.f32 %v917_v18, %v864_v17  ;;  %v812_v34 = vadd.f32 %v811_v20, %v758_v23 }
 0x109   : > { %1177 = vst [vmem:[%s2288_s26 + $0x20] sm:$0xff] %v918_v21 }
 0x10c   : > { %v865_v48 = vpop.f32.mrf.mxu2  ;;  %v760_v38 = vpop.f32.mrf.mxu0 }
 0x10d   : > { %v866_v35 = vadd.f32 %v865_v48, %v812_v34  ;;  %v919_v37 = vpop.f32.mrf.mxu3  ;;  %v761_v53 = vadd.f32 %v760_v38, %v2266_v16  ;;  %v814_v54 = vpop.f32.mrf.mxu1 }
 0x10f   : > { %v920_v57 = vadd.f32 %v919_v37, %v866_v35  ;;  %970 = vmatmul.bf16.gmra.mxu0 %v2128_v24  ;;  %v815_v39 = vadd.f32 %v814_v54, %v761_v53 }
 0x110   : > { %1024 = vmatmul.bf16.gmra.mxu1 %v2130_v25 }
 0x111   : > { %1179 = vst [vmem:[%s2288_s26 + $0x30] sm:$0xff] %v920_v57  ;;  %1078 = vmatmul.bf16.gmra.mxu2 %v2132_v26 }
 0x112   : > { %1132 = vmatmul.bf16.gmra.mxu3 %v2134_v27 }
 0x114   : > { %v868_v44 = vpop.f32.mrf.mxu2  ;;  %v762_v47 = vpop.f32.mrf.mxu0 }
 0x115   : > { %v869_v45 = vadd.f32 %v868_v44, %v815_v39  ;;  %v922_v46 = vpop.f32.mrf.mxu3  ;;  %v816_v55 = vpop.f32.mrf.mxu1  ;;  %v763_v58 = vadd.f32 %v762_v47, %v2266_v16 }
 0x117   : > { %v923_v56 = vadd.f32 %v922_v46, %v869_v45  ;;  %v817_v59 = vadd.f32 %v816_v55, %v763_v58 }
 0x119   : > { %1181 = vst [vmem:[%s2288_s26 + $0x40] sm:$0xff] %v923_v56 }
 0x11c   : > { %v870_v24 = vpop.f32.mrf.mxu2  ;;  %v765_v62 = vpop.f32.mrf.mxu0 }
 0x11d   : > { %v871_v60 = vadd.f32 %v870_v24, %v817_v59  ;;  %v924_v61 = vpop.f32.mrf.mxu3  ;;  %v766_v25 = vadd.f32 %v765_v62, %v2266_v16  ;;  %v819_v26 = vpop.f32.mrf.mxu1 }
 0x11f   : > { %v925_v27 = vadd.f32 %v924_v61, %v871_v60  ;;  %975 = vmatmul.bf16.gmra.mxu0 %v2148_v49  ;;  %v820_v63 = vadd.f32 %v819_v26, %v766_v25 }
 0x120   : > { %1029 = vmatmul.bf16.gmra.mxu1 %v2150_v50 }
 0x121   : > { %1183 = vst [vmem:[%s2288_s26 + $0x50] sm:$0xff] %v925_v27  ;;  %1083 = vmatmul.bf16.gmra.mxu2 %v2152_v51 }
 0x122   : > { %1137 = vmatmul.bf16.gmra.mxu3 %v2154_v52 }
 0x124   : > { %v873_v9 = vpop.f32.mrf.mxu2  ;;  %v767_v17 = vpop.f32.mrf.mxu0 }
 0x125   : > { %v874_v10 = vadd.f32 %v873_v9, %v820_v63  ;;  %v927_v11 = vpop.f32.mrf.mxu3  ;;  %v821_v18 = vpop.f32.mrf.mxu1  ;;  %v768_v20 = vadd.f32 %v767_v17, %v2266_v16 }
 0x127   : > { %v928_v19 = vadd.f32 %v927_v11, %v874_v10  ;;  %v822_v21 = vadd.f32 %v821_v18, %v768_v20 }
 0x129   : > { %1185 = vst [vmem:[%s2288_s26 + $0x60] sm:$0xff] %v928_v19 }
 0x12c   : > { %v875_v49 = vpop.f32.mrf.mxu2  ;;  %v770_v48 = vpop.f32.mrf.mxu0 }
 0x12d   : > { %v876_v23 = vadd.f32 %v875_v49, %v822_v21  ;;  %v929_v34 = vpop.f32.mrf.mxu3  ;;  %v771_v50 = vadd.f32 %v770_v48, %v2266_v16  ;;  %v824_v51 = vpop.f32.mrf.mxu1 }
 0x12f   : > { %v930_v52 = vadd.f32 %v929_v34, %v876_v23  ;;  %980 = vmatmul.bf16.gmra.mxu0 %v2168_v12  ;;  %v825_v35 = vadd.f32 %v824_v51, %v771_v50 }
 0x130   : > { %1034 = vmatmul.bf16.gmra.mxu1 %v2170_v13 }
 0x131   : > { %1187 = vst [vmem:[%s2288_s26 + $0x70] sm:$0xff] %v930_v52  ;;  %1088 = vmatmul.bf16.gmra.mxu2 %v2172_v14 }
 0x132   : > { %1142 = vmatmul.bf16.gmra.mxu3 %v2174_v15 }
 0x134   : > { %v878_v37 = vpop.f32.mrf.mxu2  ;;  %v772_v54 = vpop.f32.mrf.mxu0 }
 0x135   : > { %v879_v38 = vadd.f32 %v878_v37, %v825_v35  ;;  %v932_v53 = vpop.f32.mrf.mxu3  ;;  %v826_v57 = vpop.f32.mrf.mxu1  ;;  %v773_v44 = vadd.f32 %v772_v54, %v2266_v16 }
 0x137   : > { %v933_v39 = vadd.f32 %v932_v53, %v879_v38  ;;  %v827_v45 = vadd.f32 %v826_v57, %v773_v44 }
 0x139   : > { %1189 = vst [vmem:[%s2288_s26 + $0x80] sm:$0xff] %v933_v39 }
 0x13c   : > { %v880_v12 = vpop.f32.mrf.mxu2  ;;  %v775_v55 = vpop.f32.mrf.mxu0 }
 0x13d   : > { %v881_v46 = vadd.f32 %v880_v12, %v827_v45  ;;  %v934_v47 = vpop.f32.mrf.mxu3  ;;  %v776_v13 = vadd.f32 %v775_v55, %v2266_v16  ;;  %v829_v14 = vpop.f32.mrf.mxu1 }
 0x13f   : > { %v935_v15 = vadd.f32 %v934_v47, %v881_v46  ;;  %985 = vmatmul.bf16.gmra.mxu0 %v2188_v40  ;;  %v830_v56 = vadd.f32 %v829_v14, %v776_v13 }
 0x140   : > { %1039 = vmatmul.bf16.gmra.mxu1 %v2190_v41 }
 0x141   : > { %1191 = vst [vmem:[%s2288_s26 + $0x90] sm:$0xff] %v935_v15  ;;  %1093 = vmatmul.bf16.gmra.mxu2 %v2192_v42 }
 0x142   : > { %1147 = vmatmul.bf16.gmra.mxu3 %v2194_v43 }
 0x144   : > { %v883_v58 = vpop.f32.mrf.mxu2  ;;  %v777_v60 = vpop.f32.mrf.mxu0 }
 0x145   : > { %v884_v59 = vadd.f32 %v883_v58, %v830_v56  ;;  %v937_v24 = vpop.f32.mrf.mxu3  ;;  %v831_v61 = vpop.f32.mrf.mxu1  ;;  %v778_v25 = vadd.f32 %v777_v60, %v2266_v16 }
 0x147   : > { %v938_v62 = vadd.f32 %v937_v24, %v884_v59  ;;  %v832_v26 = vadd.f32 %v831_v61, %v778_v25 }
 0x149   : > { %1193 = vst [vmem:[%s2288_s26 + $0xa0] sm:$0xff] %v938_v62 }
 0x14c   : > { %v885_v40 = vpop.f32.mrf.mxu2  ;;  %v780_v9 = vpop.f32.mrf.mxu0 }
 0x14d   : > { %v886_v27 = vadd.f32 %v885_v40, %v832_v26  ;;  %v939_v63 = vpop.f32.mrf.mxu3  ;;  %v781_v41 = vadd.f32 %v780_v9, %v2266_v16  ;;  %v834_v42 = vpop.f32.mrf.mxu1 }
 0x14f   : > { %v940_v43 = vadd.f32 %v939_v63, %v886_v27  ;;  %990 = vmatmul.bf16.gmra.mxu0 %v2208_v5  ;;  %v835_v10 = vadd.f32 %v834_v42, %v781_v41 }
 0x150   : > { %1044 = vmatmul.bf16.gmra.mxu1 %v2210_v6 }
 0x151   : > { %1195 = vst [vmem:[%s2288_s26 + $0xb0] sm:$0xff] %v940_v43  ;;  %1098 = vmatmul.bf16.gmra.mxu2 %v2212_v7 }
 0x152   : > { %1152 = vmatmul.bf16.gmra.mxu3 %v2214_v8 }
 0x154   : > { %v888_v11 = vpop.f32.mrf.mxu2  ;;  %v782_v19 = vpop.f32.mrf.mxu0 }
 0x155   : > { %v889_v17 = vadd.f32 %v888_v11, %v835_v10  ;;  %v942_v18 = vpop.f32.mrf.mxu3  ;;  %v836_v20 = vpop.f32.mrf.mxu1  ;;  %v783_v49 = vadd.f32 %v782_v19, %v2266_v16 }
 0x157   : > { %v943_v21 = vadd.f32 %v942_v18, %v889_v17  ;;  %v837_v23 = vadd.f32 %v836_v20, %v783_v49 }
 0x159   : > { %1197 = vst [vmem:[%s2288_s26 + $0xc0] sm:$0xff] %v943_v21 }
 0x15c   : > { %v890_v5 = vpop.f32.mrf.mxu2  ;;  %v785_v50 = vpop.f32.mrf.mxu0 }
 0x15d   : > { %v891_v34 = vadd.f32 %v890_v5, %v837_v23  ;;  %v944_v48 = vpop.f32.mrf.mxu3  ;;  %v786_v6 = vadd.f32 %v785_v50, %v2266_v16  ;;  %v839_v7 = vpop.f32.mrf.mxu1 }
 0x15f   : > { %v945_v8 = vadd.f32 %v944_v48, %v891_v34  ;;  %995 = vmatmul.bf16.gmra.mxu0 %v2228_v28  ;;  %v840_v51 = vadd.f32 %v839_v7, %v786_v6 }
 0x160   : > { %1049 = vmatmul.bf16.gmra.mxu1 %v2230_v29 }
 0x161   : > { %1199 = vst [vmem:[%s2288_s26 + $0xd0] sm:$0xff] %v945_v8  ;;  %1103 = vmatmul.bf16.gmra.mxu2 %v2232_v30 }
 0x162   : > { %1157 = vmatmul.bf16.gmra.mxu3 %v2234_v31 }
 0x164   : > { %v893_v52 = vpop.f32.mrf.mxu2  ;;  %v787_v38 = vpop.f32.mrf.mxu0 }
 0x165   : > { %v894_v35 = vadd.f32 %v893_v52, %v840_v51  ;;  %v947_v37 = vpop.f32.mrf.mxu3  ;;  %v841_v53 = vpop.f32.mrf.mxu1  ;;  %v788_v57 = vadd.f32 %v787_v38, %v2266_v16 }
 0x167   : > { %v948_v54 = vadd.f32 %v947_v37, %v894_v35  ;;  %v842_v39 = vadd.f32 %v841_v53, %v788_v57 }
 0x169   : > { %1201 = vst [vmem:[%s2288_s26 + $0xe0] sm:$0xff] %v948_v54 }
 0x16c   : > { %v895_v28 = vpop.f32.mrf.mxu2  ;;  %v790_v12 = vpop.f32.mrf.mxu0 }
 0x16d   : > { %v896_v44 = vadd.f32 %v895_v28, %v842_v39  ;;  %v949_v45 = vpop.f32.mrf.mxu3  ;;  %v791_v29 = vadd.f32 %v790_v12, %v2266_v16  ;;  %v844_v30 = vpop.f32.mrf.mxu1 }
 0x16f   : > { %v950_v31 = vadd.f32 %v949_v45, %v896_v44  ;;  %1000 = vmatmul.bf16.gmra.mxu0 %v2248_v0  ;;  %v845_v46 = vadd.f32 %v844_v30, %v791_v29  ;;  %v2356_v0 = vperm.slane %v2260_v4, 1 }
 0x170   : > { %1054 = vmatmul.bf16.gmra.mxu1 %v2250_v1 }
 0x171   : > { %1203 = vst [vmem:[%s2288_s26 + $0xf0] sm:$0xff] %v950_v31  ;;  %1108 = vmatmul.bf16.gmra.mxu2 %v2252_v2 }
 0x172   : > { %1162 = vmatmul.bf16.gmra.mxu3 %v2254_v3 }
 0x174   : > { %v898_v47 = vpop.f32.mrf.mxu2  ;;  %v792_v14 = vpop.f32.mrf.mxu0 }
 0x175   : > { %v899_v55 = vadd.f32 %v898_v47, %v845_v46  ;;  %v952_v13 = vpop.f32.mrf.mxu3  ;;  %v846_v15 = vpop.f32.mrf.mxu1  ;;  %v793_v58 = vadd.f32 %v792_v14, %v2266_v16 }
 0x177   : > { %v953_v56 = vadd.f32 %v952_v13, %v899_v55  ;;  %v847_v59 = vadd.f32 %v846_v15, %v793_v58 }
 0x179   : > { %1205 = vst [vmem:[%s2288_s26 + $0x100] sm:$0xff] %v953_v56 }
 0x17c   : > { %v900_v24 = vpop.f32.mrf.mxu2  ;;  %v966_v2 = vpop.f32.mrf.mxu0 }
 0x17d   : > { %v901_v1 = vadd.f32 %v900_v24, %v847_v59  ;;  %v954_v60 = vpop.f32.mrf.mxu3  ;;  %v967_v3 = vadd.f32 %v966_v2, %v2356_v0  ;;  %v1020_v61 = vpop.f32.mrf.mxu1 }
 0x17f   : > { %v955_v62 = vadd.f32 %v954_v60, %v901_v1  ;;  %1005 = vmatmul.bf16.gmra.mxu0 %v2273_v22  ;;  %v1021_v25 = vadd.f32 %v1020_v61, %v967_v3 }
 0x180   : > { %1059 = vmatmul.bf16.gmra.mxu1 %v2275_v32 }
 0x181   : > { %1207 = vst [vmem:[%s2288_s26 + $0x110] sm:$0xff] %v955_v62  ;;  %1113 = vmatmul.bf16.gmra.mxu2 %v2277_v33 }
 0x182   : > { %1167 = vmatmul.bf16.gmra.mxu3 %v2280_v36 }
 0x184   : > { %v1074_v4 = vpop.f32.mrf.mxu2  ;;  %v968_v40 = vpop.f32.mrf.mxu0 }
 0x185   : > { %v1075_v16 = vadd.f32 %v1074_v4, %v1021_v25  ;;  %v1128_v26 = vpop.f32.mrf.mxu3  ;;  %v1022_v27 = vpop.f32.mrf.mxu1  ;;  %v969_v9 = vadd.f32 %v968_v40, %v2356_v0 }
 0x187   : > { %v1129_v63 = vadd.f32 %v1128_v26, %v1075_v16  ;;  %v1023_v41 = vadd.f32 %v1022_v27, %v969_v9 }
 0x189   : > { %1174 = vst [vmem:[%s2288_s26 + $0x8] sm:$0xff] %v1129_v63 }
 0x18c   : > { %v1076_v22 = vpop.f32.mrf.mxu2  ;;  %v971_v32 = vpop.f32.mrf.mxu0 }
 0x18d   : > { %v1077_v42 = vadd.f32 %v1076_v22, %v1023_v41  ;;  %v1130_v43 = vpop.f32.mrf.mxu3  ;;  %v972_v33 = vadd.f32 %v971_v32, %v2356_v0  ;;  %v1025_v10 = vpop.f32.mrf.mxu1 }
 0x18f   : > { %v1131_v36 = vadd.f32 %v1130_v43, %v1077_v42  ;;  %v1026_v11 = vadd.f32 %v1025_v10, %v972_v33 }
 0x191   : > { %1176 = vst [vmem:[%s2288_s26 + $0x18] sm:$0xff] %v1131_v36 }
 0x194   : > { %v1079_v17 = vpop.f32.mrf.mxu2  ;;  %v973_v20 = vpop.f32.mrf.mxu0 }
 0x195   : > { %v1080_v18 = vadd.f32 %v1079_v17, %v1026_v11  ;;  %v1133_v19 = vpop.f32.mrf.mxu3  ;;  %v1027_v21 = vpop.f32.mrf.mxu1  ;;  %v974_v23 = vadd.f32 %v973_v20, %v2356_v0 }
 0x197   : > { %v1134_v49 = vadd.f32 %v1133_v19, %v1080_v18  ;;  %v1028_v5 = vadd.f32 %v1027_v21, %v974_v23 }
 0x199   : > { %1178 = vst [vmem:[%s2288_s26 + $0x28] sm:$0xff] %v1134_v49 }
 0x19c   : > { %v1081_v34 = vpop.f32.mrf.mxu2  ;;  %v976_v6 = vpop.f32.mrf.mxu0 }
 0x19d   : > { %v1082_v48 = vadd.f32 %v1081_v34, %v1028_v5  ;;  %v1135_v50 = vpop.f32.mrf.mxu3  ;;  %v977_v7 = vadd.f32 %v976_v6, %v2356_v0  ;;  %v1030_v8 = vpop.f32.mrf.mxu1 }
 0x19f   : > { %v1136_v51 = vadd.f32 %v1135_v50, %v1082_v48  ;;  %v1031_v52 = vadd.f32 %v1030_v8, %v977_v7 }
 0x1a1   : > { %1180 = vst [vmem:[%s2288_s26 + $0x38] sm:$0xff] %v1136_v51 }
 0x1a4   : > { %v1084_v35 = vpop.f32.mrf.mxu2  ;;  %v978_v53 = vpop.f32.mrf.mxu0 }
 0x1a5   : > { %v1085_v37 = vadd.f32 %v1084_v35, %v1031_v52  ;;  %v1138_v38 = vpop.f32.mrf.mxu3  ;;  %v1032_v54 = vpop.f32.mrf.mxu1  ;;  %v979_v39 = vadd.f32 %v978_v53, %v2356_v0 }
 0x1a7   : > { %v1139_v57 = vadd.f32 %v1138_v38, %v1085_v37  ;;  %v1033_v28 = vadd.f32 %v1032_v54, %v979_v39 }
 0x1a9   : > { %1182 = vst [vmem:[%s2288_s26 + $0x48] sm:$0xff] %v1139_v57 }
 0x1ac   : > { %v1086_v44 = vpop.f32.mrf.mxu2  ;;  %v981_v29 = vpop.f32.mrf.mxu0 }
 0x1ad   : > { %v1087_v45 = vadd.f32 %v1086_v44, %v1033_v28  ;;  %v1140_v12 = vpop.f32.mrf.mxu3  ;;  %v982_v30 = vadd.f32 %v981_v29, %v2356_v0  ;;  %v1035_v31 = vpop.f32.mrf.mxu1 }
 0x1af   : > { %v1141_v46 = vadd.f32 %v1140_v12, %v1087_v45  ;;  %v1036_v47 = vadd.f32 %v1035_v31, %v982_v30 }
 0x1b1   : > { %1184 = vst [vmem:[%s2288_s26 + $0x58] sm:$0xff] %v1141_v46 }
 0x1b4   : > { %v1089_v55 = vpop.f32.mrf.mxu2  ;;  %v983_v15 = vpop.f32.mrf.mxu0 }
 0x1b5   : > { %v1090_v13 = vadd.f32 %v1089_v55, %v1036_v47  ;;  %v1143_v14 = vpop.f32.mrf.mxu3  ;;  %v1037_v56 = vpop.f32.mrf.mxu1  ;;  %v984_v59 = vadd.f32 %v983_v15, %v2356_v0 }
 0x1b7   : > { %v1144_v58 = vadd.f32 %v1143_v14, %v1090_v13  ;;  %v1038_v24 = vadd.f32 %v1037_v56, %v984_v59 }
 0x1b9   : > { %1186 = vst [vmem:[%s2288_s26 + $0x68] sm:$0xff] %v1144_v58 }
 0x1bc   : > { %v1091_v1 = vpop.f32.mrf.mxu2  ;;  %v986_v3 = vpop.f32.mrf.mxu0 }
 0x1bd   : > { %v1092_v60 = vadd.f32 %v1091_v1, %v1038_v24  ;;  %v1145_v2 = vpop.f32.mrf.mxu3  ;;  %v987_v61 = vadd.f32 %v986_v3, %v2356_v0  ;;  %v1040_v62 = vpop.f32.mrf.mxu1 }
 0x1bf   : > { %v1146_v25 = vadd.f32 %v1145_v2, %v1092_v60  ;;  %v1041_v4 = vadd.f32 %v1040_v62, %v987_v61 }
 0x1c1   : > { %1188 = vst [vmem:[%s2288_s26 + $0x78] sm:$0xff] %v1146_v25 }
 0x1c4   : > { %v1094_v16 = vpop.f32.mrf.mxu2  ;;  %v988_v27 = vpop.f32.mrf.mxu0 }
 0x1c5   : > { %v1095_v26 = vadd.f32 %v1094_v16, %v1041_v4  ;;  %v1148_v40 = vpop.f32.mrf.mxu3  ;;  %v1042_v63 = vpop.f32.mrf.mxu1  ;;  %v989_v41 = vadd.f32 %v988_v27, %v2356_v0 }
 0x1c7   : > { %v1149_v9 = vadd.f32 %v1148_v40, %v1095_v26  ;;  %v1043_v22 = vadd.f32 %v1042_v63, %v989_v41 }
 0x1c9   : > { %1190 = vst [vmem:[%s2288_s26 + $0x88] sm:$0xff] %v1149_v9 }
 0x1cc   : > { %v1096_v42 = vpop.f32.mrf.mxu2  ;;  %v991_v33 = vpop.f32.mrf.mxu0 }
 0x1cd   : > { %v1097_v43 = vadd.f32 %v1096_v42, %v1043_v22  ;;  %v1150_v32 = vpop.f32.mrf.mxu3  ;;  %v992_v10 = vadd.f32 %v991_v33, %v2356_v0  ;;  %v1045_v36 = vpop.f32.mrf.mxu1 }
 0x1cf   : > { %v1151_v11 = vadd.f32 %v1150_v32, %v1097_v43  ;;  %v1046_v17 = vadd.f32 %v1045_v36, %v992_v10 }
 0x1d1   : > { %1192 = vst [vmem:[%s2288_s26 + $0x98] sm:$0xff] %v1151_v11 }
 0x1d4   : > { %v1099_v18 = vpop.f32.mrf.mxu2  ;;  %v993_v21 = vpop.f32.mrf.mxu0 }
 0x1d5   : > { %v1100_v19 = vadd.f32 %v1099_v18, %v1046_v17  ;;  %v1153_v20 = vpop.f32.mrf.mxu3  ;;  %v1047_v49 = vpop.f32.mrf.mxu1  ;;  %v994_v5 = vadd.f32 %v993_v21, %v2356_v0 }
 0x1d7   : > { %v1154_v23 = vadd.f32 %v1153_v20, %v1100_v19  ;;  %v1048_v34 = vadd.f32 %v1047_v49, %v994_v5 }
 0x1d9   : > { %1194 = vst [vmem:[%s2288_s26 + $0xa8] sm:$0xff] %v1154_v23 }
 0x1dc   : > { %v1101_v48 = vpop.f32.mrf.mxu2  ;;  %v996_v7 = vpop.f32.mrf.mxu0 }
 0x1dd   : > { %v1102_v50 = vadd.f32 %v1101_v48, %v1048_v34  ;;  %v1155_v6 = vpop.f32.mrf.mxu3  ;;  %v997_v8 = vadd.f32 %v996_v7, %v2356_v0  ;;  %v1050_v51 = vpop.f32.mrf.mxu1 }
 0x1df   : > { %v1156_v52 = vadd.f32 %v1155_v6, %v1102_v50  ;;  %v1051_v35 = vadd.f32 %v1050_v51, %v997_v8 }
 0x1e1   : > { %1196 = vst [vmem:[%s2288_s26 + $0xb8] sm:$0xff] %v1156_v52 }
 0x1e4   : > { %v1104_v37 = vpop.f32.mrf.mxu2  ;;  %v998_v54 = vpop.f32.mrf.mxu0 }
 0x1e5   : > { %v1105_v38 = vadd.f32 %v1104_v37, %v1051_v35  ;;  %v1158_v53 = vpop.f32.mrf.mxu3  ;;  %v1052_v57 = vpop.f32.mrf.mxu1  ;;  %v999_v28 = vadd.f32 %v998_v54, %v2356_v0 }
 0x1e7   : > { %v1159_v39 = vadd.f32 %v1158_v53, %v1105_v38  ;;  %v1053_v44 = vadd.f32 %v1052_v57, %v999_v28 }
 0x1e9   : > { %1198 = vst [vmem:[%s2288_s26 + $0xc8] sm:$0xff] %v1159_v39 }
 0x1ec   : > { %v1106_v45 = vpop.f32.mrf.mxu2  ;;  %v1001_v30 = vpop.f32.mrf.mxu0 }
 0x1ed   : > { %v1107_v12 = vadd.f32 %v1106_v45, %v1053_v44  ;;  %v1160_v29 = vpop.f32.mrf.mxu3  ;;  %v1002_v31 = vadd.f32 %v1001_v30, %v2356_v0  ;;  %v1055_v46 = vpop.f32.mrf.mxu1 }
 0x1ef   : > { %v1161_v47 = vadd.f32 %v1160_v29, %v1107_v12  ;;  %v1056_v55 = vadd.f32 %v1055_v46, %v1002_v31 }
 0x1f1   : > { %1200 = vst [vmem:[%s2288_s26 + $0xd8] sm:$0xff] %v1161_v47 }
 0x1f4   : > { %v1109_v13 = vpop.f32.mrf.mxu2  ;;  %v1003_v56 = vpop.f32.mrf.mxu0 }
 0x1f5   : > { %v1110_v14 = vadd.f32 %v1109_v13, %v1056_v55  ;;  %v1163_v15 = vpop.f32.mrf.mxu3  ;;  %v1057_v58 = vpop.f32.mrf.mxu1  ;;  %v1004_v24 = vadd.f32 %v1003_v56, %v2356_v0 }
 0x1f7   : > { %v1164_v59 = vadd.f32 %v1163_v15, %v1110_v14  ;;  %v1058_v1 = vadd.f32 %v1057_v58, %v1004_v24 }
 0x1f9   : > { %1202 = vst [vmem:[%s2288_s26 + $0xe8] sm:$0xff] %v1164_v59 }
 0x1fc   : > { %v1111_v60 = vpop.f32.mrf.mxu2  ;;  %v1006_v61 = vpop.f32.mrf.mxu0 }
 0x1fd   : > { %v1112_v2 = vadd.f32 %v1111_v60, %v1058_v1  ;;  %v1165_v3 = vpop.f32.mrf.mxu3  ;;  %v1007_v62 = vadd.f32 %v1006_v61, %v2356_v0  ;;  %v1060_v4 = vpop.f32.mrf.mxu1 }
 0x1ff   : > { %v1166_v25 = vadd.f32 %v1165_v3, %v1112_v2  ;;  %v1061_v16 = vadd.f32 %v1060_v4, %v1007_v62 }
 0x201   : > { %1204 = vst [vmem:[%s2288_s26 + $0xf8] sm:$0xff] %v1166_v25 }
 0x204   : > { %v1114_v26 = vpop.f32.mrf.mxu2  ;;  %v1008_v63 = vpop.f32.mrf.mxu0 }
 0x205   : > { %v1115_v40 = vadd.f32 %v1114_v26, %v1061_v16  ;;  %v1168_v27 = vpop.f32.mrf.mxu3  ;;  %v1009_v41 = vadd.f32 %v1008_v63, %v2356_v0  ;;  %v1062_v22 = vpop.f32.mrf.mxu1 }
 0x207   : > { %v1169_v9 = vadd.f32 %v1168_v27, %v1115_v40  ;;  %v1063_v42 = vadd.f32 %v1062_v22, %v1009_v41 }
 0x209   : > { %1206 = vst [vmem:[%s2288_s26 + $0x108] sm:$0xff] %v1169_v9 }
 0x20c   : > { %v1116_v43 = vpop.f32.mrf.mxu2 }
 0x20d   : > { %v1117_v32 = vadd.f32 %v1116_v43, %v1063_v42  ;;  %v1170_v33 = vpop.f32.mrf.mxu3  ;;  %1216 = sbr.rel (!%p2011_p11) target bundleno = 561 (0x231), region = 48 }
 0x20f   : > { %v1171_v10 = vadd.f32 %v1170_v33, %v1117_v32 }
 0x211   : > { %1208 = vst [vmem:[%s2288_s26 + $0x118] sm:$0xff] %v1171_v10 }
 0x212   : > { %s2486_s22 = smov (!%p1219_p6, %s1218_s22), 18 }
 0x213   : > { %s1673_s7 = sshll.u32 %s2486_s22, 4 }
 0x214   : > { %s1223_s8 = ssub.s32 288, %s1673_s7 }
 0x215   : > { %s1224_s17 = sshll.u32 %s1223_s8, 4 }
 0x216   : > { %1225 = vsyncadd %s1210_s27, %s1224_s17  ;;  %p2408_p13 = scmp.ne.s32.totalorder %s1673_s7, 0  ;;  %s1677_s10 = smul.u32 288, %s1980_s16 }
 0x217   : > { %s1231_s11 = sshll.u32 %s2288_s26, 4  ;;  %s1603_s29 = sshll.u32 %s2486_s22, 8  ;;  %s2418_s11 = int_to_ptr.vmem [resolvable:$true] %s1231_s11 }
 0x218   : > { %s1229_s28 = scalar_lea.hbm %s2465_s3, %s1677_s10  ;;  %s1846_s9 = sshra.s32 %s2418_s11, 4  ;;  %s1847_s9 = int_to_ptr.vmem [resolvable:$true] %s1846_s9 }
 0x219   : > { %s1233_s5 = sshll.u32 %s1229_s28, 4  ;;  %s1848_s6 = sshrl.u32 %s1603_s29, 4  ;;  %s2420_s5 = int_to_ptr.hbm [resolvable:$true] %s1233_s5 }
 0x21a   : > { %s1853_s23 = scalar_lea.vmem %s1847_s9, %s1848_s6  ;;  %s1936_s16 = smov [#allocation8]  }
 0x21b   : > { %p1854_p11 = scmp.ne.s32.totalorder %s1847_s9, %s1853_s23  ;;  %s1857_s26 = scalar_lea.vmem %s1936_s16, 576 }
 0x21c   : > { %p1859_p9 = scmp.lt.s32.totalorder %s1857_s26, %s1853_s23 }
 0x21d   : > { %p1855_p2 = pnand %p1854_p11, %p2408_p13 }
 0x21f   : > { %p1856_p5 = pneg %p1855_p2 }
 0x221   : > { %p1861_p10 = pnand %p1859_p9, %p1856_p5 }
 0x223   : > { %1864 = shalt.err (!%p1861_p10)
}
 0x224   : > { %s1865_s4 = sshra.s32 %s2420_s5, 4  ;;  %s1876_s10 = scalar_lea.hbm %s2465_s3, 528  ;;  %s1866_s4 = int_to_ptr.hbm [resolvable:$true] %s1865_s4 }
 0x225   : > { %s1872_s7 = scalar_lea.hbm %s1866_s4, %s1848_s6  ;;  %p1877_p7 = scmp.lt.s32.totalorder %s1866_s4, %s2465_s3 }
 0x226   : > { %p1873_p1 = scmp.ne.s32.totalorder %s1866_s4, %s1872_s7  ;;  %p1878_p8 = scmp.lt.s32.totalorder %s1876_s10, %s1872_s7 }
 0x228   : > { %p1874_p0 = pnand %p1873_p1, %p2408_p13  ;;  %p1879_p4 = por %p1878_p8, %p1877_p7 }
 0x22a   : > { %p1875_p3 = pneg %p1874_p0 }
 0x22c   : > { %p1880_p12 = pnand %p1879_p4, %p1875_p3 }
 0x22e   : > { %1883 = shalt.err (!%p1880_p12)
}
 0x22f   : > { %s1937_s28 = smov 256   ;;  %s1938_s9 = smov 16  }
 0x230   : > { %1239 = dma.vmem_to_hbm [thread:$0]  (%p2408_p13), %s2418_s11, %s1603_s29, %s2420_s5, %s1210_s27, %s1937_s28, %s1937_s28, %s1938_s9  }
 0x231 PF: > { %s1248_s6 = sand.u32 1, %s1915_s12   ;;  %p2477_p6 = scmp.ne.s32.totalorder %s2471_s25, 0 }
 0x232   : > { %p2478_p11 = scmp.ge.s32.totalorder %s1927_s15, 2  ;;  %s1249_s23 = scalar_lea.sflag [#allocation4], %s1248_s6 }
 0x234   : > { %p1699_p2 = pnand %p2478_p11, %p2477_p6 }
 0x236   : > { %p1700_p5 = pneg %p1699_p2 }
 0x238   : > { %1910 = dma.done.wait (%p1700_p5), %s1249_s23, 4608  }
 0x239   : > { %1912 = vsyncadd (%p1700_p5), %s1249_s23, 4294962688  ;;  %p17_p9 = scmp.ge.s32.totalorder %s1984_s18, 4   ;;  %s2479_s12 = smov %s1919_s13 }
 0x23a   : > { %s2480_s13 = smov %s1923_s14  ;;  %s2481_s14 = smov %s1996_s21 }
 0x23b   : > { %s2482_s15 = smov %s1984_s18  ;;  %19 = sbr.rel (!%p17_p9) target bundleno = 6 (0x6), region = 85 }
 0x240   :  { %1255 = vsyncpa [#allocation3], 1 }
 0x241   :  { %1257 = vsyncpa [#allocation3 + $0x1], 1 }
 0x242   :  { %1258 = vsyncpa [#allocation6], 1 }
 0x243   :  { %1259 = vsyncpa [#allocation4], 1 }
 0x244   :  { %1261 = vsyncpa [#allocation4 + $0x1], 1 }

</bundles_post_ra>
